<compile_context>
chip_gen: v7x
topology: tpu7x:2x2x1
jax: 0.10.0
libtpu: 0.0.40
codegen_flags: <defaults>
</compile_context>

<pallas_src>
import functools

import jax
import jax.numpy as jnp
from jax.experimental import pallas as pl
from jax.experimental.pallas import tpu as pltpu


def _layernorm_kernel(x_ref, gamma_ref, beta_ref, o_ref, *, eps, inv_h):
    # x_ref: (tile_rows, H); gamma_ref/beta_ref: (1, H).
    # f32 accumulation; rsqrt lands on the EUP slot and the lane reduction on
    # the XLU slot -- both effectively free relative to the HBM-bound DMAs.
    x = x_ref[...].astype(jnp.float32)
    gamma = gamma_ref[...].astype(jnp.float32)
    beta = beta_ref[...].astype(jnp.float32)

    mean = jnp.sum(x, axis=-1, keepdims=True) * inv_h
    centered = x - mean
    # Centered (two-pass) variance kept on purpose: E[x^2]-mean^2 cancels badly
    # when |mean| >> std, and the wall-clock win would be negligible here.
    var = jnp.sum(centered * centered, axis=-1, keepdims=True) * inv_h
    scale = gamma * jax.lax.rsqrt(var + eps)          # fold gamma into scale
    o_ref[...] = (centered * scale + beta).astype(o_ref.dtype)


def _sublane_multiple(dtype):
    # Minimum second-to-last block dim: f32 -> 8, bf16 -> 16, int8/fp8 -> 32.
    itemsize = jnp.dtype(dtype).itemsize
    return max(8, 32 // max(1, itemsize))


def _tpu_vmem_and_multicore():
    """Physical VMEM per TensorCore and whether the chip has >1 TC."""
    try:
        vmem = int(pltpu.get_tpu_info().vmem_capacity_bytes)
    except Exception:
        # Non-TPU / interpret / unknown: assume the most constrained (v7x-like).
        vmem = 64 << 20
    # Heuristic: v7x exposes 64 MiB VMEM per TC and has 2 TCs per chip;
    # v5e/v6e expose 128 MiB and a single TC.
    multi_tc = vmem < (96 << 20)
    return vmem, multi_tc


def _choose_tile_rows(rows, hidden, dtype, vmem_bytes, multi_tc):
    """Pick tile rows strictly by bytes (no row cap), budgeting the
    double-buffered in/out DMA buffers AND the f32 upcast temporaries."""
    mult = _sublane_multiple(dtype)
    itemsize = jnp.dtype(dtype).itemsize
    rows_padded = pl.cdiv(rows, mult) * mult
    units = rows_padded // mult                     # rows in sublane multiples

    # Per-row VMEM footprint:
    #   2x double-buffered input + 2x double-buffered output (native dtype)
    #   ~3x full-tile f32 temporaries (x_f32, centered, scaled result).
    per_row = 4 * hidden * itemsize + 3 * hidden * 4
    budget = vmem_bytes // 2                        # ~50% of physical VMEM
    t_units = max(1, budget // (per_row * mult))
    t_units = min(t_units, units)

    steps = pl.cdiv(units, t_units)
    if multi_tc and units >= 2:
        # v7x: force an even, balanced number of grid steps so the "parallel"
        # row axis shards cleanly across both TensorCores (an odd step count
        # would leave one TC idle for a whole tile).
        steps = max(2, steps + (steps % 2))
        t_units = pl.cdiv(units, steps)
        if pl.cdiv(units, t_units) % 2:
            # Small search around the candidate for a tile size that actually
            # yields an even step count.
            candidates = list(range(t_units + 1, min(units, t_units + 4) + 1))
            candidates += list(range(t_units - 1, 0, -1))
            for cand in candidates:
                if pl.cdiv(units, cand) % 2 == 0:
                    t_units = cand
                    break
    return t_units * mult


def layer_norm(x, gamma, beta, epsilon=1e-6, tile_rows=None):
    """x: (B, S, H); gamma, beta: (H,). Normalizes over the last dim (dim=2),
    matching the PyTorch module's forward (epsilon default 1e-6)."""
    B, S, H = x.shape
    rows = B * S

    vmem_phys, multi_tc = _tpu_vmem_and_multicore()
    if tile_rows is None:
        tile_rows = _choose_tile_rows(rows, H, x.dtype, vmem_phys, multi_tc)

    x2d = x.reshape(rows, H)
    gamma2d = gamma.reshape(1, H)
    beta2d = beta.reshape(1, H)

    kernel = functools.partial(
        _layernorm_kernel, eps=float(epsilon), inv_h=1.0 / float(H)
    )

    itemsize = jnp.dtype(x.dtype).itemsize
    tile_in_bytes = tile_rows * H * itemsize
    tile_f32_bytes = tile_rows * H * 4
    # Double-buffered in+out, f32 temporaries, params + headroom; capped to
    # 75% of this chip's physical VMEM (48 MiB on v7x, 96 MiB on v5e/v6e).
    footprint = 4 * tile_in_bytes + 3 * tile_f32_bytes + (2 << 20)
    cap = (vmem_phys * 3) // 4
    vmem_limit_bytes = int(max(32 << 20, min(cap, footprint + (4 << 20))))

    grid = (pl.cdiv(rows, tile_rows),)

    out2d = pl.pallas_call(
        kernel,
        out_shape=jax.ShapeDtypeStruct((rows, H), x.dtype),
        grid_spec=pltpu.PrefetchScalarGridSpec(
            num_scalar_prefetch=0,
            grid=grid,
            in_specs=[
                pl.BlockSpec((tile_rows, H), lambda i: (i, 0)),
                pl.BlockSpec((1, H), lambda i: (0, 0)),
                pl.BlockSpec((1, H), lambda i: (0, 0)),
            ],
            out_specs=pl.BlockSpec((tile_rows, H), lambda i: (i, 0)),
        ),
        compiler_params=pltpu.CompilerParams(
            # Rows are independent -> "parallel" (shards the grid across both
            # TensorCores on v7x; a plain serial-loop label on v5e/v6e).
            dimension_semantics=("parallel",),
            vmem_limit_bytes=vmem_limit_bytes,
        ),
    )(x2d, gamma2d, beta2d)

    return out2d.reshape(B, S, H)


if __name__ == "__main__":
    # Module __init__ defaults: hidden_size=256 -> gamma=ones(256), beta=zeros(256)
    hidden_size = 256
    eps = 1e-6  # matches the PyTorch forward's default epsilon

    gamma = jnp.ones((hidden_size,), dtype=jnp.float32)
    beta = jnp.zeros((hidden_size,), dtype=jnp.float32)

    def reference(x):
        xf = x.astype(jnp.float32)
        mean = jnp.mean(xf, axis=2, keepdims=True)
        var = jnp.mean(jnp.square(xf - mean), axis=2, keepdims=True)
        return gamma * ((xf - mean) / jnp.sqrt(var + eps)) + beta

    key = jax.random.PRNGKey(0)

    # 1) f32, (batch=2, seq=8, hidden=256)
    x = jax.random.normal(key, (2, 8, hidden_size), dtype=jnp.float32)
    out = jax.block_until_ready(layer_norm(x, gamma, beta, epsilon=eps))
    assert jnp.allclose(out, reference(x), atol=1e-5, rtol=1e-5), "f32 mismatch"

    # 2) f32, ragged row count (exercises the padded/masked last tile)
    x2 = jax.random.normal(jax.random.fold_in(key, 1), (3, 5, hidden_size),
                           dtype=jnp.float32)
    out2 = jax.block_until_ready(layer_norm(x2, gamma, beta, epsilon=eps))
    assert jnp.allclose(out2, reference(x2), atol=1e-5, rtol=1e-5), "ragged mismatch"

    # 3) bf16 input path (f32 accumulation inside the kernel)
    x3 = jax.random.normal(jax.random.fold_in(key, 2), (2, 8, hidden_size),
                           dtype=jnp.float32).astype(jnp.bfloat16)
    out3 = jax.block_until_ready(layer_norm(x3, gamma, beta, epsilon=eps))
    assert jnp.allclose(out3.astype(jnp.float32), reference(x3),
                        atol=3e-2, rtol=3e-2), "bf16 mismatch"

    print("KERNEL_OK")
</pallas_src>

<mosaic_0001>
module attributes {stable_mosaic.version = 11 : i64} {
  func.func @_layernorm_kernel(%arg0: i32, %arg1: memref<8x256xf32, #tpu.memory_space<vmem>>, %arg2: memref<1x256xf32, #tpu.memory_space<vmem>>, %arg3: memref<1x256xf32, #tpu.memory_space<vmem>>, %arg4: memref<8x256xf32, #tpu.memory_space<vmem>>) attributes {dimension_semantics = [#tpu.dimension_semantics<parallel>], iteration_bounds = array<i64: 2>, scalar_prefetch = 0 : i64, scratch_operands = 0 : i64, tpu.core_type = #tpu.core_type<tc>, window_params = [{transform_indices = @transform_0, window_bounds = array<i64: 8, 256>}, {pipeline_mode = #tpu.pipeline_mode<synchronous>, transform_indices = @transform_1, window_bounds = array<i64: 1, 256>}, {pipeline_mode = #tpu.pipeline_mode<synchronous>, transform_indices = @transform_2, window_bounds = array<i64: 1, 256>}, {transform_indices = @transform_3, window_bounds = array<i64: 8, 256>}]} {
    %c0 = arith.constant 0 : index
    %c0_0 = arith.constant 0 : index
    %0 = vector.load %arg1[%c0, %c0_0] : memref<8x256xf32, #tpu.memory_space<vmem>>, vector<8x256xf32>
    %c0_1 = arith.constant 0 : index
    %c0_2 = arith.constant 0 : index
    %1 = vector.load %arg2[%c0_1, %c0_2] : memref<1x256xf32, #tpu.memory_space<vmem>>, vector<1x256xf32>
    %c0_3 = arith.constant 0 : index
    %c0_4 = arith.constant 0 : index
    %2 = vector.load %arg3[%c0_3, %c0_4] : memref<1x256xf32, #tpu.memory_space<vmem>>, vector<1x256xf32>
    %cst = arith.constant dense<0.000000e+00> : vector<8xf32>
    %3 = vector.multi_reduction <add>, %0, %cst [1] : vector<8x256xf32> to vector<8xf32>
    %4 = vector.shape_cast %3 : vector<8xf32> to vector<8x1xf32>
    %cst_5 = arith.constant 3.906250e-03 : f32
    %5 = vector.broadcast %cst_5 : f32 to vector<8x1xf32>
    %6 = arith.mulf %4, %5 : vector<8x1xf32>
    %7 = vector.broadcast %6 : vector<8x1xf32> to vector<8x256xf32>
    %8 = arith.subf %0, %7 : vector<8x256xf32>
    %9 = arith.mulf %8, %8 : vector<8x256xf32>
    %cst_6 = arith.constant dense<0.000000e+00> : vector<8xf32>
    %10 = vector.multi_reduction <add>, %9, %cst_6 [1] : vector<8x256xf32> to vector<8xf32>
    %11 = vector.shape_cast %10 : vector<8xf32> to vector<8x1xf32>
    %cst_7 = arith.constant 3.906250e-03 : f32
    %12 = vector.broadcast %cst_7 : f32 to vector<8x1xf32>
    %13 = arith.mulf %11, %12 : vector<8x1xf32>
    %cst_8 = arith.constant 9.99999997E-7 : f32
    %14 = vector.broadcast %cst_8 : f32 to vector<8x1xf32>
    %15 = arith.addf %13, %14 : vector<8x1xf32>
    %16 = math.rsqrt %15 : vector<8x1xf32>
    %17 = vector.broadcast %1 : vector<1x256xf32> to vector<8x256xf32>
    %18 = vector.broadcast %16 : vector<8x1xf32> to vector<8x256xf32>
    %19 = arith.mulf %17, %18 : vector<8x256xf32>
    %20 = arith.mulf %8, %19 : vector<8x256xf32>
    %21 = vector.broadcast %2 : vector<1x256xf32> to vector<8x256xf32>
    %22 = arith.addf %20, %21 : vector<8x256xf32>
    %c0_9 = arith.constant 0 : index
    %c0_10 = arith.constant 0 : index
    %23 = vector.load %arg4[%c0_9, %c0_10] : memref<8x256xf32, #tpu.memory_space<vmem>>, vector<8x256xf32>
    tpu.vector_store %arg4[%c0_9, %c0_10], %22 {strides = array<i32>} : memref<8x256xf32, #tpu.memory_space<vmem>>, vector<8x256xf32>,
    return
  }
  func.func @transform_0(%arg0: i32) -> (i32, i32) {
    %c0_i32 = arith.constant 0 : i32
    %c0_i32_0 = arith.constant 0 : i32
    return %arg0, %c0_i32 : i32, i32
  }
  func.func @transform_1(%arg0: i32) -> (i32, i32) {
    %c0_i32 = arith.constant 0 : i32
    %c0_i32_0 = arith.constant 0 : i32
    %c0_i32_1 = arith.constant 0 : i32
    return %c0_i32, %c0_i32_0 : i32, i32
  }
  func.func @transform_2(%arg0: i32) -> (i32, i32) {
    %c0_i32 = arith.constant 0 : i32
    %c0_i32_0 = arith.constant 0 : i32
    %c0_i32_1 = arith.constant 0 : i32
    return %c0_i32, %c0_i32_0 : i32, i32
  }
  func.func @transform_3(%arg0: i32) -> (i32, i32) {
    %c0_i32 = arith.constant 0 : i32
    %c0_i32_0 = arith.constant 0 : i32
    return %arg0, %c0_i32 : i32, i32
  }
}

</mosaic_0001>

<bundles_post_ra>
// kernel: tpu_custom_call.1
= control target key start
LH: loop header
LB: loop body
LE: loop exit
PB: predicated region body
PF: predicated region fallthrough
CT: control target
= control target key end

     0   :  { %8 = vsyncpa [#allocation3], 0  ;;  %s675_s0 = inlined_call_operand.hbm [shape: f32[16,256], index: 0, kind: input, shape index: {}]   ;;  %s676_s1 = inlined_call_operand.vmem [shape: f32[1,256], index: 1, kind: input, shape index: {}]   ;;  %s677_s2 = inlined_call_operand.vmem [shape: f32[1,256], index: 2, kind: input, shape index: {}]   ;;  %s678_s3 = inlined_call_operand.hbm [shape: f32[16,256], index: 3, kind: output, shape index: {}]  }
   0x1   :  { %10 = vsyncpa [#allocation3 + $0x1], 0 }
   0x2   :  { %11 = vsyncpa [#allocation4], 0 }
   0x3   :  { %13 = vsyncpa [#allocation4 + $0x1], 0  ;;  %s504_s12 = smov 0   ;;  %s506_s13 = smov 0  }
   0x4   :  { %s508_s14 = smov 0   ;;  %s510_s15 = smov 0  }
   0x5 LB: > { %s525_s16 = sadd.s32 4294967295, %s480_s15   ;;  %s320_s17 = sadd.s32 4294967294, %s480_s15   ;;  %s480_s15 = sphi %s510_s15, %s693_s15   ;;  %s476_s14 = sphi %s508_s14, %s692_s14   ;;  %s472_s13 = sphi %s506_s13, %s691_s13   ;;  %s468_s12 = sphi %s504_s12, %s690_s12  }
   0x6   : > { %s529_s18 = sadd.s32 1, %s480_s15   ;;  %s26_s19 = sadd.s32 1, %s476_s14 }
   0x7   : > { %s23_s20 = ssub.s32 %s480_s15, %s529_s18  ;;  %p33_p0 = scmp.ne.s32.totalorder %s476_s14, %s472_s13 }
   0x8   : > { %p24_p1 = scmp.eq.s32.totalorder %s23_s20, 0  ;;  %p34_p2 = scmp.eq.s32.totalorder %s480_s15, 0 }
   0x9   : > { %p39_p3 = scmp.ne.s32.totalorder %s472_s13, %s468_s12  ;;  %p40_p4 = scmp.eq.s32.totalorder %s525_s16, 0 }
   0xa   : > { %s541_s21 = scalar_select %p24_p1, %s476_s14, %s26_s19  }
   0xb   : > { %p543_p5 = por %p34_p2, %p33_p0  ;;  %p547_p6 = por %p40_p4, %p39_p3 }
   0xc   : > { %p105_p7 = scmp.eq.s32.totalorder %s525_s16, 1  ;;  %p111_p8 = scmp.eq.s32.totalorder %s320_s17, 1 }
   0xd   : > { %p348_p10 = scmp.lt.s32.totalorder %s480_s15, 2  ;;  %s137_s26 = sand.u32 1, %s476_s14  }
   0xe   : > { %p554_p11 = por %p105_p7, %p33_p0  ;;  %p558_p12 = por %p111_p8, %p39_p3 }
   0xf   : > { %s334_s27 = sshll.u32 %s480_s15, 8  ;;  %s323_s28 = sshll.u32 %s137_s26, 4 }
  0x10   : > { %s682_s24 = scalar_select %p554_p11, 1, 0 }
  0x11   : > { %s683_s25 = scalar_select %p558_p12, 1, 0 }
  0x12   : > { %s567_s4 = scalar_lea.hbm %s675_s0, %s334_s27  ;;  %s141_s5 = scalar_lea.vmem [#allocation2], %s323_s28 }
  0x13   : > { %s149_s6 = sshll.u32 %s141_s5, 4  ;;  %p571_p13 = pnand %p348_p10, %p543_p5  ;;  %s575_s6 = int_to_ptr.vmem [resolvable:$true] %s149_s6 }
  0x14   : > { %s138_s8 = scalar_lea.sflag [#allocation3], %s137_s26  ;;  %s384_s9 = scalar_lea.hbm %s567_s4, 256 }
  0x15   : > { %p385_p2 = scmp.ne.s32.totalorder %s567_s4, %s384_s9  ;;  %p386_p3 = pneg %p571_p13 }
  0x16   : > { %s389_s17 = scalar_lea.hbm %s675_s0, 512  ;;  %p390_p5 = scmp.lt.u32.totalorder %s567_s4, %s675_s0 }
  0x17   : > { %p387_p4 = pnand %p386_p3, %p385_p2  ;;  %p391_p8 = scmp.lt.u32.totalorder %s389_s17, %s384_s9 }
  0x18   : > { %p393_p9 = scmp.lt.u32.totalorder %s384_s9, %s567_s4 }
  0x19   : > { %p388_p7 = pneg %p387_p4  ;;  %p392_p10 = por %p391_p8, %p390_p5 }
  0x1b   : > { %p394_p0 = por %p393_p9, %p392_p10 }
  0x1d   : > { %p395_p1 = pnand %p394_p0, %p388_p7 }
  0x1f   : > { %398 = shalt.err (!%p395_p1)
}
  0x20   : > { %s399_s22 = scalar_lea.vmem %s575_s6, 256  ;;  %s482_s26 = smov [#allocation2]  }
  0x21   : > { %p400_p2 = scmp.ne.s32.totalorder %s575_s6, %s399_s22  ;;  %s404_s27 = sshll.u32 %s482_s26, 4  ;;  %s405_s27 = int_to_ptr.vmem [resolvable:$false] %s404_s27 }
  0x22   : > { %s406_s28 = scalar_lea.vmem %s405_s27, 512  ;;  %p407_p11 = scmp.lt.s32.totalorder %s575_s6, %s405_s27 }
  0x23   : > { %p402_p4 = pnand %p400_p2, %p386_p3  ;;  %p408_p5 = scmp.lt.s32.totalorder %s406_s28, %s399_s22 }
  0x25   : > { %p403_p12 = pneg %p402_p4  ;;  %p409_p8 = por %p408_p5, %p407_p11 }
  0x27   : > { %p410_p9 = pnand %p409_p8, %p403_p12 }
  0x29   : > { %413 = shalt.err (!%p410_p9)
}
  0x2a   : > { %343 = dma.hbm_to_vmem [thread:$0]  (!%p571_p13), %s567_s4, 256, %s575_s6, %s138_s8  }
  0x2b   : > { %p685_p0 = scmp.lt.s32.totalorder %s480_s15, 3  ;;  %p686_p1 = scmp.ge.s32.totalorder %s480_s15, 1 }
  0x2d   : > { %p155_p3 = pnand %p686_p1, %p685_p0 }
  0x2e   : > { %s609_s29 = sand.u32 (!%p155_p3), 1, %s472_s13  }
  0x2f   : > { %158 = sbr.rel (%p155_p3) target bundleno = 385 (0x181), region = 32  ;;  %s327_s30 = sshll.u32 (!%p155_p3), %s609_s29, 4 }
  0x30   : > { %s161_s5 = scalar_lea.sflag (!%p155_p3), [#allocation3], %s609_s29  ;;  %s164_s7 = scalar_lea.vmem (!%p155_p3), [#allocation2], %s327_s30 }
  0x36   : > { %459 = dma.done.wait (%p547_p6), %s161_s5, 256  }
  0x37   : > { %461 = vsyncadd (%p547_p6), %s161_s5, 4294967040  ;;  %v187_v0 = vld [vmem:[%s164_s7] sm:$0xff]  ;;  %v188_v1 = vld [vmem:[%s164_s7 + $0x8] sm:$0xff]  ;;  %v206_v10 = vlaneseq  ;;  %s335_s9 = sshll.u32 %s525_s16, 8  ;;  %s186_s10 = scalar_lea.vmem [#allocation5], %s327_s30 }
  0x38   : > { %v191_v2 = vadd.f32 %v188_v1, %v187_v0  ;;  %v189_v17 = vld [vmem:[%s676_s1] sm:$0x3]  ;;  %s250_s11 = sshll.u32 %s186_s10, 4  ;;  %s631_s20 = scalar_lea.hbm %s678_s3, %s335_s9  ;;  %s633_s11 = int_to_ptr.vmem [resolvable:$true] %s250_s11 }
  0x39   : > { %v207_v14 = vshrl.u32 %v206_v10, 7  ;;  %v190_v20 = vld [vmem:[%s677_s2] sm:$0x3]  ;;  %s236_s16 = scalar_lea.sflag [#allocation4], %s609_s29  ;;  %s414_s22 = scalar_lea.vmem %s633_s11, 256 }
  0x3a   : > { %192 = vadd.xlane.f32.xlu0 %v191_v2  ;;  %p415_p6 = scmp.ne.s32.totalorder %s633_s11, %s414_s22  ;;  %p687_p11 = scmp.ne.s32.totalorder %s682_s24, 0 }
  0x3b   : > { %v208_v15 = vsub.s32 0, %v207_v14  ;;  %v212_v16 = vsub.s32 1, %v207_v14  ;;  %s483_s26 = smov [#allocation5]  }
  0x3c   : > { %p416_p12 = pnand %p415_p6, %p687_p11  ;;  %s418_s27 = sshll.u32 %s483_s26, 4  ;;  %s419_s27 = int_to_ptr.vmem [resolvable:$false] %s418_s27 }
  0x3d   : > { %v209_v18 = vrot.slane %v189_v17, %v208_v15  ;;  %v213_v19 = vrot.slane %v189_v17, %v212_v16  ;;  %v224_v24 = vrot.slane %v190_v20, %v208_v15  ;;  %v228_v25 = vrot.slane %v190_v20, %v212_v16  ;;  %s420_s28 = scalar_lea.vmem %s419_s27, 512  ;;  %p421_p7 = scmp.lt.s32.totalorder %s633_s11, %s419_s27 }
  0x3e   : > { %p417_p13 = pneg %p416_p12  ;;  %p422_p10 = scmp.lt.s32.totalorder %s420_s28, %s414_s22 }
  0x40   : > { %p423_p2 = por %p422_p10, %p421_p7 }
  0x42   : > { %p424_p4 = pnand %p423_p2, %p417_p13 }
  0xc7   : > { %v193_v3 = vpop.xlane.xlu0 %192 }
  0xc8   : > { %v194_v4 = vmul.f32 0.00390625, %v193_v3 }
  0xca   : > { %v195_v5 = vsub.f32 %v187_v0, %v194_v4  ;;  %v196_v6 = vsub.f32 %v188_v1, %v194_v4 }
  0xcc   : > { %v197_v7 = vmul.f32 %v195_v5, %v195_v5  ;;  %v198_v8 = vmul.f32 %v196_v6, %v196_v6 }
  0xce   : > { %v199_v9 = vadd.f32 %v198_v8, %v197_v7 }
  0xd0   : > { %200 = vadd.xlane.f32.xlu0 %v199_v9 }
 0x15d   : > { %v201_v11 = vpop.xlane.xlu0 %200 }
 0x15e   : > { %v202_v12 = vmul.f32 0.00390625, %v201_v11 }
 0x160   : > { %v203_v13 = vadd.f32 1e-06, %v202_v12 }
 0x162   : > { %382 = vrsqrt.f32 %v203_v13 }
 0x16c   : > { %v383_v21 = vpop.eup %382 }
 0x16d   : > { %v216_v22 = vmul.f32 %v383_v21, %v209_v18  ;;  %v217_v23 = vmul.f32 %v383_v21, %v213_v19 }
 0x16f   : > { %v218_v26 = vmul.f32 %v216_v22, %v195_v5  ;;  %v219_v27 = vmul.f32 %v217_v23, %v196_v6 }
 0x171   : > { %v231_v28 = vadd.f32 %v224_v24, %v218_v26  ;;  %v232_v29 = vadd.f32 %v228_v25, %v219_v27 }
 0x173   : > { %233 = vst [vmem:[%s186_s10] sm:$0xff] %v231_v28  ;;  %234 = vst [vmem:[%s186_s10 + $0x8] sm:$0xff] %v232_v29 }
 0x174   : > { %427 = shalt.err (!%p424_p4)
}
 0x175   : > { %s428_s29 = scalar_lea.hbm %s631_s20, 256  ;;  %s432_s7 = scalar_lea.hbm %s678_s3, 512 }
 0x176   : > { %p429_p5 = scmp.ne.s32.totalorder %s631_s20, %s428_s29  ;;  %p433_p0 = scmp.lt.u32.totalorder %s631_s20, %s678_s3 }
 0x177   : > { %p434_p1 = scmp.lt.u32.totalorder %s432_s7, %s428_s29  ;;  %p436_p6 = scmp.lt.u32.totalorder %s428_s29, %s631_s20 }
 0x178   : > { %p430_p8 = pnand %p429_p5, %p687_p11 }
 0x179   : > { %p435_p3 = por %p434_p1, %p433_p0 }
 0x17a   : > { %p431_p9 = pneg %p430_p8 }
 0x17b   : > { %p437_p12 = por %p436_p6, %p435_p3 }
 0x17d   : > { %p438_p13 = pnand %p437_p12, %p431_p9 }
 0x17f   : > { %441 = shalt.err (!%p438_p13)
}
 0x180   : > { %338 = dma.vmem_to_hbm [thread:$0]  (%p687_p11), %s633_s11, 256, %s631_s20, %s236_s16  }
 0x181 PF: > { %s262_s6 = sand.u32 1, %s468_s12   ;;  %p688_p7 = scmp.ne.s32.totalorder %s683_s25, 0 }
 0x182   : > { %p689_p10 = scmp.ge.s32.totalorder %s480_s15, 2  ;;  %s263_s8 = scalar_lea.sflag [#allocation4], %s262_s6 }
 0x184   : > { %p345_p2 = pnand %p689_p10, %p688_p7 }
 0x186   : > { %463 = dma.done.wait (!%p345_p2), %s263_s8, 256  }
 0x187   : > { %465 = vsyncadd (!%p345_p2), %s263_s8, 4294967040  ;;  %p16_p4 = scmp.ge.s32.totalorder %s529_s18, 4   ;;  %s690_s12 = smov %s472_s13 }
 0x188   : > { %s691_s13 = smov %s476_s14  ;;  %s692_s14 = smov %s541_s21 }
 0x189   : > { %s693_s15 = smov %s529_s18  ;;  %18 = sbr.rel (!%p16_p4) target bundleno = 5 (0x5), region = 77 }
 0x190   :  { %268 = vsyncpa [#allocation3], 1 }
 0x191   :  { %270 = vsyncpa [#allocation3 + $0x1], 1 }
 0x192   :  { %271 = vsyncpa [#allocation4], 1 }
 0x193   :  { %273 = vsyncpa [#allocation4 + $0x1], 1 }

</bundles_post_ra>
